<compile_context>
chip_gen: v6e
topology: v6e:2x2x1
jax: 0.10.0
libtpu: 0.0.40
codegen_flags: <defaults>
</compile_context>

<pallas_src>
import jax
import jax.numpy as jnp
from jax.experimental import pallas as pl
from jax.experimental.pallas import tpu as pltpu


_TARGET_BLOCK_BYTES = 4 * 1024 * 1024   # ~4 MiB tiles (v6e/v7x sweet spot)
_VMEM_LIMIT_BYTES = 32 * 1024 * 1024    # 4 live buffers x 4 MiB = 16 MiB << 32 MiB


def _identity_copy_kernel(x_ref, o_ref):
    # Straight vld/vst stream: identical block shapes, nothing that could
    # materialize a VMEM relayout.
    o_ref[...] = x_ref[...]


def _choose_tiles(rows: int, cols: int, itemsize: int):
    """Pick a (tile_r, tile_c) block of ~<= 4 MiB, dtype/lane aligned and balanced."""
    # Sublane packing unit: 8 rows for 32-bit, 16 for bf16, 32 for int8/fp8.
    row_unit = 8 * max(1, 4 // max(1, itemsize))
    target = _TARGET_BLOCK_BYTES

    # ---- lane (last) dim: full extent, or balanced multiples of 128 ----
    if cols <= 128 or cols * itemsize * row_unit <= target:
        tile_c = cols
    else:
        n_c = pl.cdiv(cols * itemsize * row_unit, target)        # number of column tiles
        tile_c = 128 * pl.cdiv(pl.cdiv(cols, n_c), 128)          # balanced, 128-aligned
        tile_c = max(128, min(tile_c, cols))

    # ---- sublane (second-to-last) dim: full extent, or balanced multiples of row_unit ----
    if rows <= row_unit:
        tile_r = rows
    else:
        max_r = (target // max(1, tile_c * itemsize)) // row_unit * row_unit
        max_r = max(row_unit, max_r)
        n_r = pl.cdiv(rows, min(rows, max_r))                    # number of row tiles
        tile_r = row_unit * pl.cdiv(pl.cdiv(rows, n_r), row_unit)  # balanced, unit-aligned
        if tile_r >= rows:
            tile_r = rows

    # ---- guarantee >= 2 blocks along a "parallel" axis (v7x has 2 TensorCores) ----
    if tile_r >= rows and tile_c >= cols:
        if rows >= 2 * row_unit:
            cand = row_unit * pl.cdiv(pl.cdiv(rows, 2), row_unit)
            if cand >= rows:
                cand = max(row_unit, (rows // 2) // row_unit * row_unit)
            tile_r = cand
        elif cols >= 2 * 128:
            cand = 128 * pl.cdiv(pl.cdiv(cols, 2), 128)
            if cand >= cols:
                cand = max(128, (cols // 2) // 128 * 128)
            tile_c = cand

    return tile_r, tile_c


def expand_temporal_dim(x_seq: jax.Array, T: int, *, materialize_copy: bool = False) -> jax.Array:
    """Equivalent of ExpandTemporalDim(T)(x_seq): (T*B, *rest) -> (T, B, *rest).

    Default path is the free, metadata-only reshape (exactly what torch .view
    does).  Set materialize_copy=True to stream the bytes through the Pallas
    identity-copy kernel (fresh output buffer).
    """
    N = int(x_seq.shape[0])
    assert N % T == 0, "leading dim must be divisible by T"
    B = N // T
    rest = tuple(int(d) for d in x_seq.shape[1:])

    # Fast path: the op is semantically a reshape -> zero bytes moved.
    if not materialize_copy:
        return x_seq.reshape((T, B) + rest)

    F = 1
    for d in rest:
        F *= d

    # Free, metadata-only flatten of the trailing dims -> lane-dense 2-D view.
    x2 = x_seq.reshape(N, F)

    rows, cols = N, F
    itemsize = jnp.dtype(x_seq.dtype).itemsize
    tile_r, tile_c = _choose_tiles(rows, cols, itemsize)
    grid = (pl.cdiv(rows, tile_r), pl.cdiv(cols, tile_c))

    y2 = pl.pallas_call(
        _identity_copy_kernel,
        out_shape=jax.ShapeDtypeStruct((rows, cols), x_seq.dtype),
        grid_spec=pltpu.PrefetchScalarGridSpec(
            num_scalar_prefetch=0,
            grid=grid,
            in_specs=[pl.BlockSpec((tile_r, tile_c), lambda i, j: (i, j))],
            out_specs=pl.BlockSpec((tile_r, tile_c), lambda i, j: (i, j)),
        ),
        compiler_params=pltpu.CompilerParams(
            dimension_semantics=("parallel", "parallel"),
            vmem_limit_bytes=_VMEM_LIMIT_BYTES,
        ),
        cost_estimate=pl.CostEstimate(
            flops=0,
            transcendentals=0,
            bytes_accessed=2 * rows * cols * itemsize,
        ),
    )(x2)

    # Free, metadata-only regrouping of the leading dim: (T*B, F) -> (T, B, *rest).
    return y2.reshape((T, B) + rest)


if __name__ == "__main__":
    T = 4
    B = 2
    C = 4
    H = 16
    W = 16

    key = jax.random.PRNGKey(0)
    x = jax.random.normal(key, (T * B, C, H, W), dtype=jnp.float32)

    # Reference: plain reshape (what torch .view does).
    y_ref = x.reshape(T, B, C, H, W)

    # Default fast path (metadata-only reshape, zero HBM traffic).
    y_fast = jax.block_until_ready(expand_temporal_dim(x, T))

    # Materialized path: exercises the Pallas lane-dense copy kernel.
    y_mat = jax.block_until_ready(expand_temporal_dim(x, T, materialize_copy=True))

    for y in (y_fast, y_mat):
        assert y.shape == (T, B, C, H, W), y.shape
        assert y.dtype == x.dtype
        assert jnp.array_equal(y, y_ref), "mismatch vs reference reshape"

    print("KERNEL_OK")
</pallas_src>

<mosaic_0001>
module attributes {stable_mosaic.version = 11 : i64} {
  func.func @_identity_copy_kernel(%arg0: i32, %arg1: i32, %arg2: memref<8x512xf32, #tpu.memory_space<vmem>>, %arg3: memref<8x512xf32, #tpu.memory_space<vmem>>) attributes {dimension_semantics = [#tpu.dimension_semantics<parallel>, #tpu.dimension_semantics<parallel>], iteration_bounds = array<i64: 1, 2>, scalar_prefetch = 0 : i64, scratch_operands = 0 : i64, tpu.core_type = #tpu.core_type<tc>, window_params = [{transform_indices = @transform_0, window_bounds = array<i64: 8, 512>}, {transform_indices = @transform_1, window_bounds = array<i64: 8, 512>}]} {
    %c0 = arith.constant 0 : index
    %c0_0 = arith.constant 0 : index
    %0 = vector.load %arg2[%c0, %c0_0] : memref<8x512xf32, #tpu.memory_space<vmem>>, vector<8x512xf32>
    %c0_1 = arith.constant 0 : index
    %c0_2 = arith.constant 0 : index
    %1 = vector.load %arg3[%c0_1, %c0_2] : memref<8x512xf32, #tpu.memory_space<vmem>>, vector<8x512xf32>
    tpu.vector_store %arg3[%c0_1, %c0_2], %0 {strides = array<i32>} : memref<8x512xf32, #tpu.memory_space<vmem>>, vector<8x512xf32>,
    return
  }
  func.func @transform_0(%arg0: i32, %arg1: i32) -> (i32, i32) {
    %c0_i32 = arith.constant 0 : i32
    return %arg0, %arg1 : i32, i32
  }
  func.func @transform_1(%arg0: i32, %arg1: i32) -> (i32, i32) {
    %c0_i32 = arith.constant 0 : i32
    return %arg0, %arg1 : i32, i32
  }
}

</mosaic_0001>

<bundles_post_ra>
// kernel: tpu_custom_call.1
= control target key start
LH: loop header
LB: loop body
LE: loop exit
PB: predicated region body
PF: predicated region fallthrough
CT: control target
= control target key end

     0   :  { %6 = vsyncpa [#allocation3], 0  ;;  %s609_s0 = inlined_call_operand.hbm [shape: f32[8,1024], index: 0, kind: input, shape index: {}]   ;;  %s610_s1 = inlined_call_operand.hbm [shape: f32[8,1024], index: 1, kind: output, shape index: {}]  }
   0x1   :  { %8 = vsyncpa [#allocation3 + $0x1], 0 }
   0x2   :  { %9 = vsyncpa [#allocation4], 0 }
   0x3   :  { %11 = vsyncpa [#allocation4 + $0x1], 0  ;;  %s463_s6 = smov 0   ;;  %s465_s7 = smov 0  }
   0x4   :  { %s467_s8 = smov 0   ;;  %s469_s9 = smov 0  }
   0x5   :  { %s471_s10 = smov 0   ;;  %s473_s11 = smov 0  }
   0x6 LB: > { %s262_s12 = sadd.s32 4294967295, %s449_s11   ;;  %s263_s13 = sadd.s32 4294967294, %s449_s11   ;;  %s449_s11 = sphi %s473_s11, %s17_s11   ;;  %s445_s10 = sphi %s471_s10, %s622_s10   ;;  %s441_s9 = sphi %s469_s9, %s621_s9   ;;  %s437_s8 = sphi %s467_s8, %s620_s8   ;;  %s433_s7 = sphi %s465_s7, %s619_s7   ;;  %s429_s6 = sphi %s463_s6, %s618_s6  }
   0x7   : > { %s26_s14 = sadd.s32 1, %s445_s10  ;;  %s38_s15 = sadd.s32 1, %s437_s8 }
   0x8   : > { %p27_p0 = scmp.ge.s32.totalorder %s26_s14, 2  ;;  %p45_p1 = scmp.ne.s32.totalorder %s437_s8, %s433_s7 }
   0x9   : > { %p46_p2 = scmp.eq.s32.totalorder %s449_s11, 0  ;;  %p51_p3 = scmp.ne.s32.totalorder %s433_s7, %s429_s6 }
   0xa   : > { %s624_s14 = smov (%p27_p0, %s26_s14), 0  ;;  %p52_p5 = scmp.eq.s32.totalorder %s262_s12, 0 }
   0xb   : > { %p504_p4 = por %p46_p2, %p45_p1  ;;  %s34_s17 = ssub.s32 %s445_s10, %s624_s14 }
   0xc   : > { %p77_p6 = scmp.eq.s32.totalorder %s262_s12, 1  ;;  %p36_p7 = scmp.eq.s32.totalorder %s34_s17, 0 }
   0xd   : > { %p510_p8 = por %p52_p5, %p51_p3  ;;  %p83_p10 = scmp.eq.s32.totalorder %s263_s13, 1 }
   0xe   : > { %p514_p9 = por %p77_p6, %p45_p1  ;;  %p291_p13 = scmp.lt.s32.totalorder %s449_s11, 2 }
   0xf   : > { %s519_s20 = scalar_select %p36_p7, %s437_s8, %s38_s15  }
  0x10   : > { %p521_p11 = por %p83_p10, %p51_p3  ;;  %s103_s22 = sand.u32 1, %s437_s8  }
  0x11   : > { %s266_s23 = sshll.u32 %s103_s22, 5  ;;  %s277_s24 = sshll.u32 %s445_s10, 9 }
  0x12   : > { %s614_s21 = scalar_select %p521_p11, 1, 0 }
  0x13   : > { %s115_s27 = scalar_lea.hbm %s609_s0, %s277_s24  ;;  %s107_s28 = scalar_lea.vmem [#allocation2], %s266_s23 }
  0x14   : > { %s117_s29 = sshll.u32 %s107_s28, 4  ;;  %p534_p0 = pnand %p291_p13, %p504_p4  ;;  %s118_s29 = int_to_ptr.vmem [resolvable:$true] %s117_s29 }
  0x15   : > { %p269_p1 = scmp.ge.s32.totalorder %s449_s11, 1  ;;  %p122_p2 = scmp.lt.s32.totalorder %s449_s11, 3 }
  0x16   : > { %s104_s2 = scalar_lea.sflag [#allocation3], %s103_s22  ;;  %p343_p3 = pneg %p534_p0 }
  0x17   : > { %s354_s3 = scalar_lea.vmem %s118_s29, 512  ;;  %s451_s4 = smov [#allocation2]  }
  0x18   : > { %p355_p5 = scmp.ne.s32.totalorder %s118_s29, %s354_s3  ;;  %s359_s5 = sshll.u32 %s451_s4, 4  ;;  %s360_s5 = int_to_ptr.vmem [resolvable:$false] %s359_s5 }
  0x19   : > { %s361_s12 = scalar_lea.vmem %s360_s5, 1024  ;;  %p362_p10 = scmp.lt.s32.totalorder %s118_s29, %s360_s5 }
  0x1a   : > { %p357_p6 = pnand %p355_p5, %p343_p3  ;;  %p363_p12 = scmp.lt.s32.totalorder %s361_s12, %s354_s3 }
  0x1c   : > { %p358_p7 = pneg %p357_p6  ;;  %p364_p4 = por %p363_p12, %p362_p10 }
  0x1e   : > { %p365_p13 = pnand %p364_p4, %p358_p7 }
  0x20   : > { %368 = shalt.err (!%p365_p13)
}
  0x21   : > { %286 = dma.hbm_to_vmem [thread:$0]  (!%p534_p0), %s115_s27, 512, %s118_s29, %s104_s2  }
  0x22   : > { %p123_p11 = pnand %p269_p1, %p122_p2 }
  0x23   : > { %s549_s13 = sand.u32 (!%p123_p11), 1, %s433_s7  }
  0x24   : > { %126 = sbr.rel (%p123_p11) target bundleno = 66 (0x42), region = 24  ;;  %s270_s15 = sshll.u32 (!%p123_p11), %s549_s13, 5 }
  0x25   : > { %s129_s16 = scalar_lea.sflag (!%p123_p11), [#allocation3], %s549_s13  ;;  %s132_s17 = scalar_lea.vmem (!%p123_p11), [#allocation2], %s270_s15 }
  0x29   : > { %420 = dma.done.wait (%p510_p8), %s129_s16, 512  }
  0x2a   : > { %422 = vsyncadd (%p510_p8), %s129_s16, 4294966784  ;;  %s150_s22 = scalar_lea.vmem [#allocation5], %s270_s15  ;;  %s278_s24 = sshll.u32 %s441_s9, 9  ;;  %v153_v0 = vld [vmem:[%s132_s17] sm:$0xff]  ;;  %v154_v1 = vld [vmem:[%s132_s17 + $0x8] sm:$0xff] }
  0x2b   : > { %s178_s23 = sshll.u32 %s150_s22, 4  ;;  %v155_v2 = vld [vmem:[%s132_s17 + $0x10] sm:$0xff]  ;;  %s563_s27 = scalar_lea.hbm %s610_s1, %s278_s24  ;;  %157 = vst [vmem:[%s150_s22] sm:$0xff] %v153_v0  ;;  %158 = vst [vmem:[%s150_s22 + $0x8] sm:$0xff] %v154_v1  ;;  %v156_v3 = vld [vmem:[%s132_s17 + $0x18] sm:$0xff]  ;;  %s558_s23 = int_to_ptr.vmem [resolvable:$true] %s178_s23 }
  0x2c   : > { %159 = vst [vmem:[%s150_s22 + $0x10] sm:$0xff] %v155_v2  ;;  %160 = vst [vmem:[%s150_s22 + $0x18] sm:$0xff] %v156_v3  ;;  %s162_s18 = scalar_lea.sflag [#allocation4], %s549_s13  ;;  %s369_s9 = scalar_lea.vmem %s558_s23, 512 }
  0x2d   : > { %p370_p8 = scmp.ne.s32.totalorder %s558_s23, %s369_s9  ;;  %s452_s28 = smov [#allocation5]  }
  0x2e   : > { %s373_s29 = sshll.u32 %s452_s28, 4  ;;  %s374_s29 = int_to_ptr.vmem [resolvable:$false] %s373_s29 }
  0x2f   : > { %p371_p11 = pnand %p370_p8, %p514_p9  ;;  %s375_s30 = scalar_lea.vmem %s374_s29, 1024 }
  0x30   : > { %p376_p0 = scmp.lt.s32.totalorder %s558_s23, %s374_s29  ;;  %p377_p1 = scmp.lt.s32.totalorder %s375_s30, %s369_s9 }
  0x31   : > { %p372_p12 = pneg %p371_p11 }
  0x32   : > { %p378_p2 = por %p377_p1, %p376_p0 }
  0x34   : > { %p379_p3 = pnand %p378_p2, %p372_p12 }
  0x36   : > { %382 = shalt.err (!%p379_p3)
}
  0x37   : > { %s383_s2 = scalar_lea.hbm %s563_s27, 512  ;;  %s387_s5 = scalar_lea.hbm %s610_s1, 1024 }
  0x38   : > { %p384_p5 = scmp.ne.s32.totalorder %s563_s27, %s383_s2  ;;  %p388_p10 = scmp.lt.s32.totalorder %s563_s27, %s610_s1 }
  0x39   : > { %p389_p4 = scmp.lt.s32.totalorder %s387_s5, %s383_s2 }
  0x3a   : > { %p385_p6 = pnand %p384_p5, %p514_p9 }
  0x3b   : > { %p390_p13 = por %p389_p4, %p388_p10 }
  0x3c   : > { %p386_p7 = pneg %p385_p6 }
  0x3e   : > { %p391_p8 = pnand %p390_p13, %p386_p7 }
  0x40   : > { %394 = shalt.err (!%p391_p8)
}
  0x41   : > { %281 = dma.vmem_to_hbm [thread:$0]  (%p514_p9), %s558_s23, 512, %s563_s27, %s162_s18  }
  0x42 PF: > { %s190_s15 = sand.u32 1, %s429_s6   ;;  %p616_p11 = scmp.ne.s32.totalorder %s614_s21, 0 }
  0x43   : > { %p617_p12 = scmp.ge.s32.totalorder %s449_s11, 2  ;;  %s191_s16 = scalar_lea.sflag [#allocation4], %s190_s15 }
  0x45   : > { %p288_p0 = pnand %p617_p12, %p616_p11 }
  0x47   : > { %p289_p1 = pneg %p288_p0 }
  0x49   : > { %424 = dma.done.wait (%p289_p1), %s191_s16, 512  }
  0x4a   : > { %426 = vsyncadd (%p289_p1), %s191_s16, 4294966784  ;;  %s17_s11 = sadd.s32 1, %s449_s11   ;;  %s618_s6 = smov %s433_s7 }
  0x4b   : > { %p14_p2 = scmp.ge.s32.totalorder %s17_s11, 4   ;;  %s619_s7 = smov %s437_s8 }
  0x4c   : > { %s620_s8 = smov %s519_s20  ;;  %s621_s9 = smov %s445_s10 }
  0x4d   : > { %s622_s10 = smov %s624_s14  ;;  %16 = sbr.rel (!%p14_p2) target bundleno = 6 (0x6), region = 69 }
  0x52   :  { %196 = vsyncpa [#allocation3], 1 }
  0x53   :  { %198 = vsyncpa [#allocation3 + $0x1], 1 }
  0x54   :  { %199 = vsyncpa [#allocation4], 1 }
  0x55   :  { %201 = vsyncpa [#allocation4 + $0x1], 1 }

</bundles_post_ra>
